<compile_context>
chip_gen: v5e
topology: v5e:2x2
jax: 0.10.0
libtpu: 0.0.40
codegen_flags: <defaults>
</compile_context>

<pallas_src>
import math

import jax
import jax.numpy as jnp
from jax.experimental import pallas as pl
from jax.experimental.pallas import tpu as pltpu


# ----------------------------------------------------------------------------
# Fused AttFlat kernel: TB batch elements per grid step.
#   x_ref    : (TB, N, H)          activations (f32)
#   mask_ref : (TB, N, 1)          float mask, 1.0 == padded / masked position
#   w1,b1    : (H, 2H) bf16, (1, 2H) f32        PositionWiseFFN.dense1
#   w2,b2    : (2H, g) bf16, (1, g)  f32        PositionWiseFFN.dense2
#   wm,bm    : (g, H, out) bf16, (1, out) f32   linear_merge
#   o_ref    : (TB, out) f32
# ----------------------------------------------------------------------------
def attflat_fused_kernel(x_ref, mask_ref, w1_ref, b1_ref, w2_ref, b2_ref,
                         wm_ref, bm_ref, o_ref):
    tb, n, hidden = x_ref.shape
    glimpses = w2_ref.shape[1]

    # bf16 operands for the MXU; f32 accumulation everywhere.
    x_bf = x_ref[...].astype(jnp.bfloat16)                 # (tb, n, H)
    x2d = x_bf.reshape(tb * n, hidden)                     # free leading-dim merge

    # PositionWiseFFN: dense1 -> ReLU -> (dropout: no-op) -> dense2, applied
    # position-wise => one big (tb*n, H) @ (H, 2H) matmul.
    h = jnp.dot(x2d, w1_ref[...], preferred_element_type=jnp.float32) + b1_ref[...]
    h = jnp.maximum(h, 0.0)
    logits = (jnp.dot(h.astype(jnp.bfloat16), w2_ref[...],
                      preferred_element_type=jnp.float32)
              + b2_ref[...])                               # (tb*n, g) f32

    # masked_fill(-65504) + softmax over the sequence axis (torch dim=1).
    # mask is already (tb, n, 1): broadcast select, no relayout, f32 math.
    logits = logits.reshape(tb, n, glimpses)
    logits = jnp.where(mask_ref[...] > 0.0, jnp.float32(-65504.0), logits)
    logits = logits - jnp.max(logits, axis=1, keepdims=True)
    e = jnp.exp(logits)
    p = e / jnp.sum(e, axis=1, keepdims=True)              # (tb, n, g) f32

    # Attention pooling on the MXU: pooled[b,g,h] = sum_n p[b,n,g] * x[b,n,h]
    pooled = jnp.einsum("bng,bnh->bgh", p.astype(jnp.bfloat16), x_bf,
                        preferred_element_type=jnp.float32)  # (tb, g, H)

    # linear_merge: torch.cat(att_list, dim=1) is glimpse-major, so wm row
    # gi*H + h == wm_ref[gi, h].  Contract per glimpse with a statically
    # unrolled loop (avoids the (g,H)->(g*H) sublane->lane relayout).
    merged = jnp.dot(pooled[:, 0, :].astype(jnp.bfloat16), wm_ref[0],
                     preferred_element_type=jnp.float32)
    for gi in range(1, glimpses):
        merged = merged + jnp.dot(pooled[:, gi, :].astype(jnp.bfloat16),
                                  wm_ref[gi],
                                  preferred_element_type=jnp.float32)
    o_ref[...] = merged + bm_ref[...]                      # (tb, out)


# ----------------------------------------------------------------------------
# Batch-tile picker: >= ~target_rows rows per grid step to fill the MXU and
# amortize grid overhead.  TB must divide B and satisfy (TB % 8 == 0 or
# TB == B) so the (TB, out) output block obeys the (8, 128) tiling rule.
# ----------------------------------------------------------------------------
def _pick_batch_tile(batch, seq, target_rows=512):
    if batch * seq <= target_rows:
        return batch
    tb = max(8, (target_rows // max(seq, 1)) // 8 * 8)
    tb = min(tb, batch)
    while tb >= 8:
        if batch % tb == 0:
            return tb
        tb -= 8
    return batch


# ----------------------------------------------------------------------------
# Wrapper
# ----------------------------------------------------------------------------
def att_flat(params, x, x_mask=None):
    B, N, H = x.shape
    G = params["w2"].shape[1]                  # glimpses
    out_dim = params["wm"].shape[1]
    assert params["wm"].shape[0] == G * H

    # ---- wrapper-side layout / dtype prep (cheap HBM-level ops) -----------
    if x_mask is None:
        mask = jnp.zeros((B, N, 1), jnp.float32)
    else:
        # accepts (B,1,1,N) / (B,1,N) / (B,N) bool masks, True == masked
        mask = x_mask.reshape(B, N, 1).astype(jnp.float32)

    # pad out_dim to a lane-dense multiple of 128 (full vst, no masked stores)
    out_pad = ((out_dim + 127) // 128) * 128
    wm3 = params["wm"].reshape(G, H, out_dim)
    bm = params["bm"]
    if out_pad != out_dim:
        wm3 = jnp.pad(wm3, ((0, 0), (0, 0), (0, out_pad - out_dim)))
        bm = jnp.pad(bm, ((0, 0), (0, out_pad - out_dim)))

    # bf16 MXU operands for the weights; biases stay f32
    w1 = params["w1"].astype(jnp.bfloat16)
    w2 = params["w2"].astype(jnp.bfloat16)
    wm3 = wm3.astype(jnp.bfloat16)
    b1, b2 = params["b1"], params["b2"]

    TB = _pick_batch_tile(B, N)
    grid = (B // TB,)

    # ---- VMEM budget: double-buffered activation tiles + resident weights --
    act_bytes = TB * N * H * 4 + TB * N * 4 + TB * out_pad * 4
    weight_bytes = ((w1.size + w2.size + wm3.size) * 2
                    + (b1.size + b2.size + bm.size) * 4)
    vmem_limit = int(min(max(2 * (act_bytes + weight_bytes) + (8 << 20),
                             32 << 20), 64 << 20))

    cost = pl.CostEstimate(
        flops=(2 * B * N * H * (2 * H) + 2 * B * N * (2 * H) * G
               + 2 * B * N * G * H + 2 * B * G * H * out_pad),
        transcendentals=B * N * G,
        bytes_accessed=int(x.size * 4 + mask.size * 4 + weight_bytes
                           + B * out_pad * 4),
    )

    out = pl.pallas_call(
        attflat_fused_kernel,
        out_shape=jax.ShapeDtypeStruct((B, out_pad), jnp.float32),
        grid=grid,
        in_specs=[
            pl.BlockSpec((TB, N, H), lambda b: (b, 0, 0)),        # x
            pl.BlockSpec((TB, N, 1), lambda b: (b, 0, 0)),        # mask
            # weights/biases: constant block index -> DMA'd once, VMEM-resident
            pl.BlockSpec(w1.shape, lambda b: (0, 0)),
            pl.BlockSpec(b1.shape, lambda b: (0, 0)),
            pl.BlockSpec(w2.shape, lambda b: (0, 0)),
            pl.BlockSpec(b2.shape, lambda b: (0, 0)),
            pl.BlockSpec(wm3.shape, lambda b: (0, 0, 0)),
            pl.BlockSpec(bm.shape, lambda b: (0, 0)),
        ],
        out_specs=pl.BlockSpec((TB, out_pad), lambda b: (b, 0)),
        compiler_params=pltpu.CompilerParams(
            dimension_semantics=("parallel",),   # megacore / v7x TC sharding
            vmem_limit_bytes=vmem_limit,
        ),
        cost_estimate=cost,
    )(x, mask, w1, b1, w2, b2, wm3, bm)

    return out[:, :out_dim]


# ----------------------------------------------------------------------------
# Deterministic parameter init (torch nn.Linear-style uniform), f32 storage
# ----------------------------------------------------------------------------
class KeyGen:
    def __init__(self, key):
        self._key = key

    def __call__(self):
        self._key, sub = jax.random.split(self._key)
        return sub


def init_attflat_params(key, hidden, out_dim, glimpses=1):
    kg = KeyGen(key)

    def lin(din, dout):
        lim = 1.0 / math.sqrt(din)
        w = jax.random.uniform(kg(), (din, dout), jnp.float32, -lim, lim)
        b = jax.random.uniform(kg(), (1, dout), jnp.float32, -lim, lim)
        return w, b

    w1, b1 = lin(hidden, 2 * hidden)          # PositionWiseFFN.dense1
    w2, b2 = lin(2 * hidden, glimpses)        # PositionWiseFFN.dense2
    wm, bm = lin(hidden * glimpses, out_dim)  # linear_merge
    return dict(w1=w1, b1=b1, w2=w2, b2=b2, wm=wm, bm=bm)


# ----------------------------------------------------------------------------
# Pure-JAX f32 reference (for correctness check only)
# ----------------------------------------------------------------------------
def ref_attflat(params, x, x_mask=None):
    b, n, _ = x.shape
    g = params["w2"].shape[1]
    att = jnp.maximum(x @ params["w1"] + params["b1"][0], 0.0)
    att = att @ params["w2"] + params["b2"][0]                 # (b, n, g)
    if x_mask is not None:
        att = jnp.where(x_mask.reshape(b, n, 1), -65504.0, att)
    att = jax.nn.softmax(att, axis=1)
    pooled = jnp.concatenate(
        [jnp.sum(att[:, :, i:i + 1] * x, axis=1) for i in range(g)], axis=1)
    return pooled @ params["wm"] + params["bm"][0]


# ----------------------------------------------------------------------------
if __name__ == "__main__":
    HIDDEN, OUT_DIM = 128, 128
    B, N = 2, 8

    root = jax.random.PRNGKey(0)
    k_p1, k_p2, k_x = jax.random.split(root, 3)

    x = jax.random.normal(k_x, (B, N, HIDDEN), jnp.float32)
    lens = jnp.array([8, 5])
    x_mask = (jnp.arange(N)[None, :] >= lens[:, None]).reshape(B, 1, 1, N)

    # kernel uses bf16 matmul operands (f32 accumulation / softmax), so the
    # comparison against the pure-f32 reference uses a widened tolerance.
    TOL = 2e-2

    # glimpses = 1 (module default): masked path
    p1 = init_attflat_params(k_p1, HIDDEN, OUT_DIM, glimpses=1)
    out = att_flat(p1, x, x_mask)
    jax.block_until_ready(out)
    ref = ref_attflat(p1, x, x_mask)
    assert out.shape == (B, OUT_DIM)
    assert jnp.allclose(out, ref, rtol=TOL, atol=TOL), \
        float(jnp.max(jnp.abs(out - ref)))

    # x_mask=None path (module allows it)
    out_nm = att_flat(p1, x, None)
    jax.block_until_ready(out_nm)
    ref_nm = ref_attflat(p1, x, None)
    assert jnp.allclose(out_nm, ref_nm, rtol=TOL, atol=TOL), \
        float(jnp.max(jnp.abs(out_nm - ref_nm)))

    # glimpses = 2 exercises the per-glimpse merge path (no relayout)
    p2 = init_attflat_params(k_p2, HIDDEN, OUT_DIM, glimpses=2)
    out2 = att_flat(p2, x, x_mask)
    jax.block_until_ready(out2)
    ref2 = ref_attflat(p2, x, x_mask)
    assert out2.shape == (B, OUT_DIM)
    assert jnp.allclose(out2, ref2, rtol=TOL, atol=TOL), \
        float(jnp.max(jnp.abs(out2 - ref2)))

    print("KERNEL_OK")
</pallas_src>

<mosaic_0001>
module attributes {stable_mosaic.version = 11 : i64} {
  func.func @attflat_fused_kernel(%arg0: i32, %arg1: memref<2x8x128xf32, #tpu.memory_space<vmem>>, %arg2: memref<2x8x1xf32, #tpu.memory_space<vmem>>, %arg3: memref<128x256xbf16, #tpu.memory_space<vmem>>, %arg4: memref<1x256xf32, #tpu.memory_space<vmem>>, %arg5: memref<256x1xbf16, #tpu.memory_space<vmem>>, %arg6: memref<1x1xf32, #tpu.memory_space<vmem>>, %arg7: memref<1x128x128xbf16, #tpu.memory_space<vmem>>, %arg8: memref<1x128xf32, #tpu.memory_space<vmem>>, %arg9: memref<2x128xf32, #tpu.memory_space<vmem>>) attributes {dimension_semantics = [#tpu.dimension_semantics<parallel>], iteration_bounds = array<i64: 1>, scalar_prefetch = 0 : i64, scratch_operands = 0 : i64, tpu.core_type = #tpu.core_type<tc>, window_params = [{transform_indices = @transform_0, window_bounds = array<i64: 2, 8, 128>}, {transform_indices = @transform_1, window_bounds = array<i64: 2, 8, 1>}, {pipeline_mode = #tpu.pipeline_mode<synchronous>, transform_indices = @transform_2, window_bounds = array<i64: 128, 256>}, {pipeline_mode = #tpu.pipeline_mode<synchronous>, transform_indices = @transform_3, window_bounds = array<i64: 1, 256>}, {pipeline_mode = #tpu.pipeline_mode<synchronous>, transform_indices = @transform_4, window_bounds = array<i64: 256, 1>}, {pipeline_mode = #tpu.pipeline_mode<synchronous>, transform_indices = @transform_5, window_bounds = array<i64: 1, 1>}, {pipeline_mode = #tpu.pipeline_mode<synchronous>, transform_indices = @transform_6, window_bounds = array<i64: 1, 128, 128>}, {pipeline_mode = #tpu.pipeline_mode<synchronous>, transform_indices = @transform_7, window_bounds = array<i64: 1, 128>}, {transform_indices = @transform_8, window_bounds = array<i64: 2, 128>}]} {
    %c0 = arith.constant 0 : index
    %c0_0 = arith.constant 0 : index
    %c0_1 = arith.constant 0 : index
    %0 = vector.load %arg1[%c0, %c0_0, %c0_1] : memref<2x8x128xf32, #tpu.memory_space<vmem>>, vector<2x8x128xf32>
    %1 = arith.truncf %0 : vector<2x8x128xf32> to vector<2x8x128xbf16>
    %2 = vector.shape_cast %1 : vector<2x8x128xbf16> to vector<16x128xbf16>
    %c0_2 = arith.constant 0 : index
    %c0_3 = arith.constant 0 : index
    %3 = vector.load %arg3[%c0_2, %c0_3] : memref<128x256xbf16, #tpu.memory_space<vmem>>, vector<128x256xbf16>
    %cst = arith.constant dense<0.000000e+00> : vector<16x256xf32>
    %4 = tpu.matmul %2, %3, %cst {dimension_numbers = #tpu.dot_dimension_numbers<[1], [0], [0], [1], [0, 0, 1, 1], [], []>} : vector<16x128xbf16>, vector<128x256xbf16>, vector<16x256xf32> -> vector<16x256xf32>
    %c0_4 = arith.constant 0 : index
    %c0_5 = arith.constant 0 : index
    %5 = vector.load %arg4[%c0_4, %c0_5] : memref<1x256xf32, #tpu.memory_space<vmem>>, vector<1x256xf32>
    %6 = vector.broadcast %5 : vector<1x256xf32> to vector<16x256xf32>
    %7 = arith.addf %4, %6 : vector<16x256xf32>
    %cst_6 = arith.constant 0.000000e+00 : f32
    %8 = vector.broadcast %cst_6 : f32 to vector<16x256xf32>
    %9 = arith.maximumf %7, %8 : vector<16x256xf32>
    %10 = arith.truncf %9 : vector<16x256xf32> to vector<16x256xbf16>
    %c0_7 = arith.constant 0 : index
    %c0_8 = arith.constant 0 : index
    %11 = vector.load %arg5[%c0_7, %c0_8] : memref<256x1xbf16, #tpu.memory_space<vmem>>, vector<256x1xbf16>
    %cst_9 = arith.constant dense<0.000000e+00> : vector<16x1xf32>
    %12 = tpu.matmul %10, %11, %cst_9 {dimension_numbers = #tpu.dot_dimension_numbers<[1], [0], [0], [1], [0, 0, 1, 1], [], []>} : vector<16x256xbf16>, vector<256x1xbf16>, vector<16x1xf32> -> vector<16x1xf32>
    %c0_10 = arith.constant 0 : index
    %c0_11 = arith.constant 0 : index
    %13 = vector.load %arg6[%c0_10, %c0_11] : memref<1x1xf32, #tpu.memory_space<vmem>>, vector<1x1xf32>
    %14 = vector.broadcast %13 : vector<1x1xf32> to vector<16x1xf32>
    %15 = arith.addf %12, %14 : vector<16x1xf32>
    %16 = vector.shape_cast %15 : vector<16x1xf32> to vector<2x8x1xf32>
    %c0_12 = arith.constant 0 : index
    %c0_13 = arith.constant 0 : index
    %c0_14 = arith.constant 0 : index
    %17 = vector.load %arg2[%c0_12, %c0_13, %c0_14] : memref<2x8x1xf32, #tpu.memory_space<vmem>>, vector<2x8x1xf32>
    %cst_15 = arith.constant 0.000000e+00 : f32
    %18 = vector.broadcast %cst_15 : f32 to vector<2x8x1xf32>
    %19 = arith.cmpf ogt, %17, %18 : vector<2x8x1xf32>
    %cst_16 = arith.constant -6.550400e+04 : f32
    %20 = vector.broadcast %cst_16 : f32 to vector<2x8x1xf32>
    %21 = arith.select %19, %20, %16 : vector<2x8x1xi1>, vector<2x8x1xf32>
    %cst_17 = arith.constant dense<0xFF800000> : vector<2x1xf32>
    %22 = vector.multi_reduction <maximumf>, %21, %cst_17 [1] : vector<2x8x1xf32> to vector<2x1xf32>
    %23 = vector.shape_cast %22 : vector<2x1xf32> to vector<2x1x1xf32>
    %24 = vector.broadcast %23 : vector<2x1x1xf32> to vector<2x8x1xf32>
    %25 = arith.subf %21, %24 : vector<2x8x1xf32>
    %26 = math.exp %25 : vector<2x8x1xf32>
    %cst_18 = arith.constant dense<0.000000e+00> : vector<2x1xf32>
    %27 = vector.multi_reduction <add>, %26, %cst_18 [1] : vector<2x8x1xf32> to vector<2x1xf32>
    %28 = vector.shape_cast %27 : vector<2x1xf32> to vector<2x1x1xf32>
    %29 = vector.broadcast %28 : vector<2x1x1xf32> to vector<2x8x1xf32>
    %30 = arith.divf %26, %29 : vector<2x8x1xf32>
    %31 = arith.truncf %30 : vector<2x8x1xf32> to vector<2x8x1xbf16>
    "tpu.trace_start"() <{level = 10 : i32, message = "bng,bnh->bgh"}> : () -> ()
    %cst_19 = arith.constant dense<0.000000e+00> : vector<2x1x128xf32>
    %32 = tpu.matmul %31, %1, %cst_19 {dimension_numbers = #tpu.dot_dimension_numbers<[1], [1], [2], [2], [0, 0, 0, 2, 1, 2], [0], [0]>} : vector<2x8x1xbf16>, vector<2x8x128xbf16>, vector<2x1x128xf32> -> vector<2x1x128xf32>
    "tpu.trace_stop"() : () -> ()
    %33 = vector.shape_cast %32 : vector<2x1x128xf32> to vector<2x128xf32>
    %34 = arith.truncf %33 : vector<2x128xf32> to vector<2x128xbf16>
    %c0_20 = arith.constant 0 : index
    %c0_21 = arith.constant 0 : index
    %c0_22 = arith.constant 0 : index
    %35 = vector.load %arg7[%c0_20, %c0_21, %c0_22] : memref<1x128x128xbf16, #tpu.memory_space<vmem>>, vector<1x128x128xbf16>
    %36 = vector.shape_cast %35 : vector<1x128x128xbf16> to vector<128x128xbf16>
    %cst_23 = arith.constant dense<0.000000e+00> : vector<2x128xf32>
    %37 = tpu.matmul %34, %36, %cst_23 {dimension_numbers = #tpu.dot_dimension_numbers<[1], [0], [0], [1], [0, 0, 1, 1], [], []>} : vector<2x128xbf16>, vector<128x128xbf16>, vector<2x128xf32> -> vector<2x128xf32>
    %c0_24 = arith.constant 0 : index
    %c0_25 = arith.constant 0 : index
    %38 = vector.load %arg8[%c0_24, %c0_25] : memref<1x128xf32, #tpu.memory_space<vmem>>, vector<1x128xf32>
    %39 = vector.broadcast %38 : vector<1x128xf32> to vector<2x128xf32>
    %40 = arith.addf %37, %39 : vector<2x128xf32>
    %c0_26 = arith.constant 0 : index
    %c0_27 = arith.constant 0 : index
    %41 = vector.load %arg9[%c0_26, %c0_27] : memref<2x128xf32, #tpu.memory_space<vmem>>, vector<2x128xf32>
    tpu.vector_store %arg9[%c0_26, %c0_27], %40 {strides = array<i32>} : memref<2x128xf32, #tpu.memory_space<vmem>>, vector<2x128xf32>,
    return
  }
  func.func @transform_0(%arg0: i32) -> (i32, i32, i32) {
    %c0_i32 = arith.constant 0 : i32
    %c0_i32_0 = arith.constant 0 : i32
    %c0_i32_1 = arith.constant 0 : i32
    return %arg0, %c0_i32, %c0_i32_0 : i32, i32, i32
  }
  func.func @transform_1(%arg0: i32) -> (i32, i32, i32) {
    %c0_i32 = arith.constant 0 : i32
    %c0_i32_0 = arith.constant 0 : i32
    %c0_i32_1 = arith.constant 0 : i32
    return %arg0, %c0_i32, %c0_i32_0 : i32, i32, i32
  }
  func.func @transform_2(%arg0: i32) -> (i32, i32) {
    %c0_i32 = arith.constant 0 : i32
    %c0_i32_0 = arith.constant 0 : i32
    %c0_i32_1 = arith.constant 0 : i32
    return %c0_i32, %c0_i32_0 : i32, i32
  }
  func.func @transform_3(%arg0: i32) -> (i32, i32) {
    %c0_i32 = arith.constant 0 : i32
    %c0_i32_0 = arith.constant 0 : i32
    %c0_i32_1 = arith.constant 0 : i32
    return %c0_i32, %c0_i32_0 : i32, i32
  }
  func.func @transform_4(%arg0: i32) -> (i32, i32) {
    %c0_i32 = arith.constant 0 : i32
    %c0_i32_0 = arith.constant 0 : i32
    %c0_i32_1 = arith.constant 0 : i32
    return %c0_i32, %c0_i32_0 : i32, i32
  }
  func.func @transform_5(%arg0: i32) -> (i32, i32) {
    %c0_i32 = arith.constant 0 : i32
    %c0_i32_0 = arith.constant 0 : i32
    %c0_i32_1 = arith.constant 0 : i32
    return %c0_i32, %c0_i32_0 : i32, i32
  }
  func.func @transform_6(%arg0: i32) -> (i32, i32, i32) {
    %c0_i32 = arith.constant 0 : i32
    %c0_i32_0 = arith.constant 0 : i32
    %c0_i32_1 = arith.constant 0 : i32
    %c0_i32_2 = arith.constant 0 : i32
    return %c0_i32, %c0_i32_0, %c0_i32_1 : i32, i32, i32
  }
  func.func @transform_7(%arg0: i32) -> (i32, i32) {
    %c0_i32 = arith.constant 0 : i32
    %c0_i32_0 = arith.constant 0 : i32
    %c0_i32_1 = arith.constant 0 : i32
    return %c0_i32, %c0_i32_0 : i32, i32
  }
  func.func @transform_8(%arg0: i32) -> (i32, i32) {
    %c0_i32 = arith.constant 0 : i32
    %c0_i32_0 = arith.constant 0 : i32
    return %arg0, %c0_i32 : i32, i32
  }
}

</mosaic_0001>

<bundles_post_ra>
// kernel: tpu_custom_call.1
= control target key start
LH: loop header
LB: loop body
LE: loop exit
PB: predicated region body
PF: predicated region fallthrough
CT: control target
= control target key end

     0   :  { %s1114_s0 = inlined_call_operand.vmem [shape: f32[2,8,128], index: 0, kind: input, shape index: {}]   ;;  %s1115_s1 = inlined_call_operand.vmem [shape: f32[2,8,1], index: 1, kind: input, shape index: {}]   ;;  %s1116_s2 = inlined_call_operand.vmem [shape: bf16[128,256], index: 2, kind: input, shape index: {}]   ;;  %s1117_s3 = inlined_call_operand.vmem [shape: f32[1,256], index: 3, kind: input, shape index: {}]   ;;  %s1118_s4 = inlined_call_operand.vmem [shape: bf16[256,1], index: 4, kind: input, shape index: {}]   ;;  %s1119_s5 = inlined_call_operand.<no memory space> [shape: f32[1,1], index: 5, kind: input, shape index: {}]   ;;  %s1120_s6 = inlined_call_operand.hbm [shape: bf16[1,128,128], index: 6, kind: input, shape index: {}]   ;;  %s1121_s7 = inlined_call_operand.vmem [shape: f32[1,128], index: 7, kind: input, shape index: {}]   ;;  %s1122_s8 = inlined_call_operand.hbm [shape: f32[2,128], index: 8, kind: output, shape index: {}]  }
   0x1   :  { %v13_v0 = vstv %s1119_s5 }
   0x2   :  { %14 = vst [vmem:[#allocation2] sm:$0x1] %v13_v0 }
   0x3   :  { %15 = vsyncpa [#allocation4], 0 }
   0x4   :  { %16 = vsyncpa [#allocation5], 0  ;;  %s33_s9 = sshll.u32 %s1120_s6, 4  ;;  %s882_s10 = smov [#allocation3]   ;;  %s34_s9 = int_to_ptr.hbm [resolvable:$true] %s33_s9 }
   0x5   :  { %s35_s11 = sshll.u32 %s882_s10, 4  ;;  %s883_s12 = smov 64   ;;  %s36_s11 = int_to_ptr.vmem [resolvable:$true] %s35_s11 }
   0x6   :  { %s884_s13 = smov 4  }
   0x7   :  { %41 = dma.hbm_to_vmem [thread:$0]  %s34_s9, 1024, %s36_s11, [#allocation4], %s883_s12, %s883_s12, %s884_s13  }
   0x8   :  { %878 = dma.done.wait [#allocation4], 1024  }
   0x9   :  { %879 = vsyncadd [#allocation4], 4294966272  ;;  %v668_v1 = vld [vmem:[%s1116_s2 + $0x70] sm:$0xf]  ;;  %v787_v2 = vld [vmem:[%s1116_s2 + $0x74] sm:$0xf0] }
   0xa   :  { %v786_v3 = vld [vmem:[%s1116_s2 + $0x74] sm:$0xf]  ;;  %v669_v4 = vor.u32 %v787_v2, %v668_v1  ;;  %v670_v5 = vld [vmem:[%s1116_s2 + $0x78] sm:$0xf0]  ;;  %v660_v6 = vld [vmem:[%s1116_s2 + $0x60] sm:$0xf] }
   0xb   :  { %v785_v7 = vld [vmem:[%s1116_s2 + $0x64] sm:$0xf0]  ;;  %v673_v8 = vor.u32 %v786_v3, %v670_v5  ;;  %v784_v9 = vld [vmem:[%s1116_s2 + $0x64] sm:$0xf]  ;;  %v662_v10 = vld [vmem:[%s1116_s2 + $0x68] sm:$0xf0] }
   0xc   :  { %161 = vmatpush.bf16.msra.mxu0 %v669_v4  ;;  %v661_v11 = vor.u32 %v785_v7, %v660_v6  ;;  %v665_v12 = vor.u32 %v784_v9, %v662_v10  ;;  %v652_v13 = vld [vmem:[%s1116_s2 + $0x50] sm:$0xf]  ;;  %v783_v14 = vld [vmem:[%s1116_s2 + $0x54] sm:$0xf0]  ;;  %v782_v15 = vld [vmem:[%s1116_s2 + $0x54] sm:$0xf] }
   0xd   :  { %175 = vmatpush.bf16.msra.mxu1 %v673_v8  ;;  %v654_v16 = vld [vmem:[%s1116_s2 + $0x58] sm:$0xf0]  ;;  %v653_v17 = vor.u32 %v783_v14, %v652_v13  ;;  %v644_v19 = vld [vmem:[%s1116_s2 + $0x40] sm:$0xf]  ;;  %v781_v20 = vld [vmem:[%s1116_s2 + $0x44] sm:$0xf0] }
   0xe   :  { %v657_v18 = vor.u32 %v782_v15, %v654_v16  ;;  %v780_v21 = vld [vmem:[%s1116_s2 + $0x44] sm:$0xf]  ;;  %v646_v22 = vld [vmem:[%s1116_s2 + $0x48] sm:$0xf0]  ;;  %v645_v23 = vor.u32 %v781_v20, %v644_v19  ;;  %v795_v24 = vld [vmem:[%s1118_s4 + $0x38] sm:$0xff]  ;;  %vm361_vm1 = vcmask 7168  }
   0xf   :  { %v803_v25 = vld [vmem:[%s1118_s4 + $0x78] sm:$0xff]  ;;  %v649_v26 = vor.u32 %v780_v21, %v646_v22  ;;  %v636_v27 = vld [vmem:[%s1116_s2 + $0x30] sm:$0xf]  ;;  %v778_v29 = vld [vmem:[%s1116_s2 + $0x34] sm:$0xf]  ;;  %327 = vmatpush.bf16.msra.mxu2 %v795_v24  ;;  %vm448_vm3 = vcmask 1043456  }
  0x10   :  { %162 = vmatpush.bf16.msra.mxu0 %v661_v11  ;;  %v779_v28 = vld [vmem:[%s1116_s2 + $0x34] sm:$0xf0]  ;;  %v638_v30 = vld [vmem:[%s1116_s2 + $0x38] sm:$0xf0]  ;;  %341 = vmatpush.bf16.msra.mxu3 %v803_v25  ;;  %v794_v31 = vld [vmem:[%s1118_s4 + $0x30] sm:$0xff]  ;;  %vm444_vm12 = vcmask 64512  }
  0x11   :  { %176 = vmatpush.bf16.msra.mxu1 %v665_v12  ;;  %v802_v32 = vld [vmem:[%s1118_s4 + $0x70] sm:$0xff]  ;;  %v637_v33 = vor.u32 %v779_v28, %v636_v27  ;;  %v641_v34 = vor.u32 %v778_v29, %v638_v30  ;;  %v628_v35 = vld [vmem:[%s1116_s2 + $0x20] sm:$0xf]  ;;  %v777_v36 = vld [vmem:[%s1116_s2 + $0x24] sm:$0xf0]  ;;  %vm527_vm13 = vcmask 1041409  }
  0x12   :  { %v776_v37 = vld [vmem:[%s1116_s2 + $0x24] sm:$0xf]  ;;  %v630_v38 = vld [vmem:[%s1116_s2 + $0x28] sm:$0xf0]  ;;  %v629_v41 = vor.u32 %v777_v36, %v628_v35  ;;  %v620_v45 = vld [vmem:[%s1116_s2 + $0x10] sm:$0xf] }
  0x13   :  { %328 = vmatpush.bf16.msra.mxu2 %v794_v31  ;;  %v793_v39 = vld [vmem:[%s1118_s4 + $0x28] sm:$0xff]  ;;  %v49_v42 = vld [vmem:[%s1114_s0] sm:$0xff]  ;;  %v633_v44 = vor.u32 %v776_v37, %v630_v38  ;;  %v775_v46 = vld [vmem:[%s1116_s2 + $0x14] sm:$0xf0]  ;;  %s885_s6 = smov [#allocation6]   ;;  %s600_s22 = sshll.u32 %s1122_s8, 4  ;;  %s601_s22 = int_to_ptr.hbm [resolvable:$true] %s600_s22 }
  0x14   :  { %163 = vmatpush.bf16.msra.mxu0 %v653_v17  ;;  %342 = vmatpush.bf16.msra.mxu3 %v802_v32  ;;  %v801_v40 = vld [vmem:[%s1118_s4 + $0x68] sm:$0xff]  ;;  %v774_v47 = vld [vmem:[%s1116_s2 + $0x14] sm:$0xf]  ;;  %v622_v48 = vld [vmem:[%s1116_s2 + $0x18] sm:$0xf0]  ;;  %v1051_v51 = vpack.c.bf16 %v49_v42, %v49_v42  ;;  %v621_v53 = vor.u32 %v775_v46, %v620_v45  ;;  %s598_s19 = sshll.u32 %s885_s6, 4  ;;  %s599_s19 = int_to_ptr.vmem [resolvable:$true] %s598_s19 }
  0x15   :  { %177 = vmatpush.bf16.msra.mxu1 %v657_v18  ;;  %v50_v43 = vld [vmem:[%s1114_s0 + $0x8] sm:$0xff]  ;;  %v792_v49 = vld [vmem:[%s1118_s4 + $0x20] sm:$0xff]  ;;  %v625_v54 = vor.u32 %v774_v47, %v622_v48  ;;  %v791_v0 = vld [vmem:[%s1118_s4 + $0x18] sm:$0xff] }
  0x16   :  { %v800_v50 = vld [vmem:[%s1118_s4 + $0x60] sm:$0xff]  ;;  %v1053_v52 = vpack.c.bf16 %v50_v43, %v50_v43  ;;  %v773_v56 = vld [vmem:[%s1116_s2 + $0x4] sm:$0xf0]  ;;  %v614_v58 = vld [vmem:[%s1116_s2 + $0x8] sm:$0xf0]  ;;  %v77_v59 = vunpack.c.l.b16 %v1051_v51 }
  0x17   :  { %329 = vmatpush.bf16.msra.mxu2 %v793_v39  ;;  %v612_v55 = vld [vmem:[%s1116_s2] sm:$0xf]  ;;  %v772_v57 = vld [vmem:[%s1116_s2 + $0x4] sm:$0xf]  ;;  %v799_v1 = vld [vmem:[%s1118_s4 + $0x58] sm:$0xff] }
  0x18   :  { %164 = vmatpush.bf16.msra.mxu0 %v645_v23  ;;  %343 = vmatpush.bf16.msra.mxu3 %v801_v40  ;;  %v78_v60 = vunpack.c.l.b16 %v1053_v52  ;;  %v613_v61 = vor.u32 %v773_v56, %v612_v55  ;;  %v617_v62 = vor.u32 %v772_v57, %v614_v58  ;;  %v790_v2 = vld [vmem:[%s1118_s4 + $0x10] sm:$0xff]  ;;  %v789_v4 = vld [vmem:[%s1118_s4 + $0x8] sm:$0xff]  ;;  %v788_v6 = vld [vmem:[%s1118_s4] sm:$0xff] }
  0x19   :  { %178 = vmatpush.bf16.msra.mxu1 %v649_v26  ;;  %v798_v3 = vld [vmem:[%s1118_s4 + $0x50] sm:$0xff]  ;;  %v797_v5 = vld [vmem:[%s1118_s4 + $0x48] sm:$0xff]  ;;  %v796_v7 = vld [vmem:[%s1118_s4 + $0x40] sm:$0xff] }
  0x1a   :  { %v79_v63 = vpack.c.b16 %v78_v60, %v77_v59  ;;  %v69_v8 = vld [vmem:[%s1117_s3] sm:$0x3] }
  0x1b   :  { %330 = vmatpush.bf16.msra.mxu2 %v792_v49  ;;  %v71_v11 = vperm.slane %v69_v8, 0  ;;  %v72_v12 = vperm.slane %v69_v8, 1  ;;  %v820_v25 = vld [vmem:[#allocation2] ss:$0 sm:$0xff] }
  0x1c   :  { %165 = vmatpush.bf16.msra.mxu0 %v637_v33  ;;  %344 = vmatpush.bf16.msra.mxu3 %v800_v50  ;;  %v355_v26 = vld [vmem:[%s1115_s1] sm:$0xff] }
  0x1d   :  { %179 = vmatpush.bf16.msra.mxu1 %v641_v34  ;;  %vm357_vm0 = vcmp.gt.f32.partialorder %v355_v26, 0.0  ;;  %v356_v34 = vld [vmem:[%s1115_s1 + $0x8] sm:$0xff] }
  0x1e   :  { %vm358_vm2 = vcmp.gt.f32.partialorder %v356_v34, 0.0  ;;  %v811_v34 = vld [vmem:[#allocation3 + $0x38] sm:$0xff] }
  0x1f   :  { %331 = vmatpush.bf16.msra.mxu2 %v791_v0 }
  0x20   :  { %166 = vmatpush.bf16.msra.mxu0 %v629_v41  ;;  %345 = vmatpush.bf16.msra.mxu3 %v799_v1 }
  0x21   :  { %180 = vmatpush.bf16.msra.mxu1 %v633_v44 }
  0x23   :  { %332 = vmatpush.bf16.msra.mxu2 %v790_v2 }
  0x24   :  { %167 = vmatpush.bf16.msra.mxu0 %v621_v53  ;;  %346 = vmatpush.bf16.msra.mxu3 %v798_v3 }
  0x25   :  { %181 = vmatpush.bf16.msra.mxu1 %v625_v54 }
  0x27   :  { %333 = vmatpush.bf16.msra.mxu2 %v789_v4 }
  0x28   :  { %168 = vmatpush.bf16.msra.mxu0 %v613_v61  ;;  %347 = vmatpush.bf16.msra.mxu3 %v797_v5 }
  0x29   :  { %182 = vmatpush.bf16.msra.mxu1 %v617_v62 }
  0x2b   :  { %169 = vmatmul.bf16.vlgmr.msra.gmra.mxu0 %v79_v63  ;;  %334 = vmatpush.bf16.msra.mxu2 %v788_v6  ;;  %v485_v6 = vsel %vm448_vm3, %v1053_v52, 0 }
  0x2c   :  { %183 = vmatmul.bf16.vlgmr.msra.gmra.mxu1 %v79_v63  ;;  %348 = vmatpush.bf16.msra.mxu3 %v796_v7  ;;  %v450_v7 = vsel %vm448_vm3, %v1051_v51, 0 }
  0x2d   :  { %494 = vmatpush.bf16.msrb.mxu1 %v485_v6  ;;  %459 = vmatpush.bf16.msrb.mxu0 %v450_v7 }
  0x2f   :  { %579 = vmatpush.bf16.msrb.mxu2 %v811_v34 }
  0xa8   :  { %v170_v9 = vpop.f32.mrf.mxu0 }
  0xa9   :  { %v184_v10 = vpop.f32.mrf.mxu1  ;;  %v171_v13 = vadd.f32 %v170_v9, %v71_v11 }
  0xaa   :  { %v185_v14 = vadd.f32 %v184_v10, %v72_v12 }
  0xab   :  { %v189_v19 = vmax.f32 %v171_v13, 0.0 }
  0xac   :  { %v190_v21 = vmax.f32 %v185_v14, 0.0 }
  0xb0   :  { %v172_v15 = vpop.f32.mrf.mxu0 }
  0xb1   :  { %v173_v16 = vadd.f32 %v172_v15, %v71_v11  ;;  %v186_v17 = vpop.f32.mrf.mxu1 }
  0xb2   :  { %v187_v18 = vadd.f32 %v186_v17, %v72_v12 }
  0xb3   :  { %v191_v20 = vmax.f32 %v173_v16, 0.0 }
  0xb4   :  { %v192_v22 = vmax.f32 %v187_v18, 0.0 }
  0xb5   :  { %v193_v23 = vpack.c.bf16 %v191_v20, %v189_v19 }
  0xb6   :  { %v194_v24 = vpack.c.bf16 %v192_v22, %v190_v21 }
  0xb7   :  { %335 = vmatmul.bf16.vlgmr.msra.gmra.mxu2 %v193_v23 }
  0xb8   :  { %349 = vmatmul.bf16.vlgmr.msra.gmra.mxu3 %v194_v24 }
 0x13a   :  { %v336_v27 = vpop.f32.mrf.mxu2 }
 0x13b   :  { %v337_v28 = vadd.f32 %v820_v25, %v336_v27  ;;  %v350_v29 = vpop.f32.mrf.mxu3 }
 0x13d   :  { %v351_v30 = vadd.f32 %v350_v29, %v337_v28 }
 0x13f   :  { %v359_v31 = vsel %vm357_vm0, -65504.0, %v351_v30 }
 0x140   :  { %v362_v32 = vsel %vm361_vm1, %v359_v31, -inf }
 0x141   :  { %v363_v33 = vrot.slane %v362_v32, 4 }
 0x142   :  { %v338_v35 = vpop.f32.mrf.mxu2 }
 0x143   :  { %v364_v36 = vmax.f32 %v362_v32, %v363_v33  ;;  %v339_v37 = vadd.f32 %v820_v25, %v338_v35  ;;  %v352_v38 = vpop.f32.mrf.mxu3  ;;  %v810_v35 = vld [vmem:[#allocation3 + $0x30] sm:$0xff] }
 0x144   :  { %580 = vmatpush.bf16.msrb.mxu2 %v810_v35 }
 0x145   :  { %v365_v39 = vrot.slane %v364_v36, 2  ;;  %v353_v40 = vadd.f32 %v352_v38, %v339_v37  ;;  %v808_v37 = vld [vmem:[#allocation3 + $0x20] sm:$0xff] }
 0x147   :  { %v366_v41 = vmax.f32 %v364_v36, %v365_v39  ;;  %v360_v42 = vsel %vm358_vm2, -65504.0, %v353_v40  ;;  %v809_v36 = vld [vmem:[#allocation3 + $0x28] sm:$0xff]  ;;  %v807_v40 = vld [vmem:[#allocation3 + $0x18] sm:$0xff] }
 0x148   :  { %v369_v43 = vsel %vm361_vm1, %v360_v42, -inf  ;;  %581 = vmatpush.bf16.msrb.mxu2 %v809_v36 }
 0x149   :  { %v367_v44 = vrot.slane %v366_v41, 1  ;;  %v370_v45 = vrot.slane %v369_v43, 4 }
 0x14b   :  { %v368_v46 = vmax.f32 %v366_v41, %v367_v44  ;;  %v371_v47 = vmax.f32 %v369_v43, %v370_v45  ;;  %v806_v41 = vld [vmem:[#allocation3 + $0x10] sm:$0xff]  ;;  %v804_v43 = vld [vmem:[#allocation3] sm:$0xff] }
 0x14c   :  { %582 = vmatpush.bf16.msrb.mxu2 %v808_v37 }
 0x14d   :  { %v376_v48 = vsub.f32 %v359_v31, %v368_v46  ;;  %v372_v49 = vrot.slane %v371_v47, 2 }
 0x14f   :  { %v378_v50 = vmul.f32 1.442695, %v376_v48  ;;  %v373_v53 = vmax.f32 %v371_v47, %v372_v49 }
 0x150   :  { %583 = vmatpush.bf16.msrb.mxu2 %v807_v40 }
 0x151   :  { %822 = vpow2.f32 %v378_v50  ;;  %v374_v54 = vrot.slane %v373_v53, 1 }
 0x153   :  { %v375_v55 = vmax.f32 %v373_v53, %v374_v54 }
 0x154   :  { %584 = vmatpush.bf16.msrb.mxu2 %v806_v41 }
 0x155   :  { %v377_v56 = vsub.f32 %v360_v42, %v375_v55  ;;  %v805_v42 = vld [vmem:[#allocation3 + $0x8] sm:$0xff] }
 0x157   :  { %v823_v57 = vpop.eup %822  ;;  %v380_v58 = vmul.f32 1.442695, %v377_v56 }
 0x158   :  { %v382_v59 = vsel %vm361_vm1, %v823_v57, 0.0  ;;  %585 = vmatpush.bf16.msrb.mxu2 %v805_v42 }
 0x159   :  { %v383_v60 = vrot.slane %v382_v59, 4  ;;  %824 = vpow2.f32 %v380_v58 }
 0x15b   :  { %v384_v61 = vadd.f32 %v383_v60, %v382_v59 }
 0x15c   :  { %586 = vmatpush.bf16.msrb.mxu2 %v804_v43 }
 0x15d   :  { %v385_v62 = vrot.slane %v384_v61, 2 }
 0x15f   :  { %v825_v63 = vpop.eup %824  ;;  %v386_v0 = vadd.f32 %v385_v62, %v384_v61 }
 0x160   :  { %v389_v1 = vsel %vm361_vm1, %v825_v63, 0.0 }
 0x161   :  { %v387_v2 = vrot.slane %v386_v0, 1  ;;  %v390_v3 = vrot.slane %v389_v1, 4 }
 0x163   :  { %v388_v4 = vadd.f32 %v387_v2, %v386_v0  ;;  %v391_v5 = vadd.f32 %v390_v3, %v389_v1 }
 0x165   :  { %826 = vrcp.f32 %v388_v4  ;;  %v392_v8 = vrot.slane %v391_v5, 2  ;;  %v407_v18 = vand.u32 2147483648, %v388_v4  ;;  %vm401_vm5 = vweird.f32 %v388_v4 }
 0x166   :  { %v405_v52 = vand.u32 2147483647, %v388_v4 }
 0x167   :  { %v393_v9 = vadd.f32 %v392_v8, %v391_v5  ;;  %v408_v21 = vor.u32 1.1754944e-38, %v407_v18 }
 0x168   :  { %vm406_vm7 = vcmp.eq.f32.partialorder %v405_v52, 8.507059e+37 }
 0x169   :  { %v394_v10 = vrot.slane %v393_v9, 1 }
 0x16b   :  { %v827_v11 = vpop.eup %826  ;;  %v395_v12 = vadd.f32 %v394_v10, %v393_v9 }
 0x16c   :  { %v397_v13 = vmul.f32 %v827_v11, %v388_v4  ;;  %vm402_vm4 = vweird.f32 %v827_v11 }
 0x16d   :  { %828 = vrcp.f32 %v395_v12  ;;  %vm403_vm6 = vmor %vm401_vm5, %vm402_vm4  ;;  %v422_v22 = vand.u32 2147483648, %v395_v12  ;;  %v420_v24 = vand.u32 2147483647, %v395_v12  ;;  %vm416_vm9 = vweird.f32 %v395_v12 }
 0x16e   :  { %v398_v14 = vsub.f32 1.0, %v397_v13 }
 0x16f   :  { %v423_v27 = vor.u32 1.1754944e-38, %v422_v22  ;;  %vm421_vm11 = vcmp.eq.f32.partialorder %v420_v24, 8.507059e+37 }
 0x170   :  { %v399_v15 = vmul.f32 %v827_v11, %v398_v14 }
 0x172   :  { %v400_v16 = vadd.f32 %v827_v11, %v399_v15 }
 0x173   :  { %v829_v17 = vpop.eup %828 }
 0x174   :  { %v412_v19 = vmul.f32 %v829_v17, %v395_v12  ;;  %v404_v51 = vsel %vm403_vm6, %v827_v11, %v400_v16  ;;  %vm417_vm8 = vweird.f32 %v829_v17 }
 0x175   :  { %v409_v25 = vsel %vm406_vm7, %v408_v21, %v404_v51  ;;  %vm418_vm10 = vmor %vm416_vm9, %vm417_vm8 }
 0x176   :  { %v413_v20 = vsub.f32 1.0, %v412_v19  ;;  %v410_v28 = vmul.f32 %v823_v57, %v409_v25  ;;  %v821_v57 = vld [vmem:[%s1121_s7] ss:$0 sm:$0xff] }
 0x178   :  { %v414_v23 = vmul.f32 %v829_v17, %v413_v20  ;;  %v426_v32 = vpack.c.bf16 %v410_v28, %v410_v28 }
 0x17a   :  { %v415_v26 = vadd.f32 %v829_v17, %v414_v23 }
 0x17c   :  { %v419_v29 = vsel %vm418_vm10, %v829_v17, %v415_v26 }
 0x17d   :  { %v424_v30 = vsel %vm421_vm11, %v423_v27, %v419_v29 }
 0x17e   :  { %v425_v31 = vmul.f32 %v825_v63, %v424_v30 }
 0x180   :  { %v427_v33 = vpack.c.bf16 %v425_v31, %v425_v31 }
 0x182   :  { %817 = vxpose.binary.xlu0.c.b16.start.end [1/2] (short) (narrow) %v426_v32, %v427_v33, 16 }
 0x22e   :  { %v818_v38 = vpop.trf.xlu0 }
 0x22f   :  { %739 = vmatmul.msk.bf16.vlgmr.msrb.gmra.mxu1 %vm444_vm12, %v818_v38 }
 0x236   :  { %v819_v39 = vpop.trf.xlu0 }
 0x237   :  { %738 = vmatmul.msk.bf16.vlgmr.msrb.gmra.mxu0 %vm444_vm12, %v819_v39 }
 0x2ac   :  { %v496_v44 = vpop.f32.mrf.mxu1 }
 0x2ad   :  { %v501_v45 = vpack.c.bf16 %v496_v44, %v496_v44 }
 0x2af   :  { %v525_v46 = vunpack.c.l.b16 %v501_v45 }
 0x2b1   :  { %v526_v50 = vrot.slane %v525_v46, 7 }
 0x2b4   :  { %v461_v47 = vpop.f32.mrf.mxu0  ;;  %v498_v48 = vpop.f32.mrf.mxu1 }
 0x2b5   :  { %v500_v49 = vpack.c.bf16 %v461_v47, %v461_v47 }
 0x2b7   :  { %v524_v53 = vunpack.c.l.b16 %v500_v49 }
 0x2b9   :  { %v528_v54 = vsel %vm527_vm13, %v526_v50, %v524_v53 }
 0x2ba   :  { %v529_v55 = vpack.c.b16 %v528_v54, %v528_v54 }
 0x2bc   :  { %v463_v56 = vpop.f32.mrf.mxu0  ;;  %587 = vmatmul.bf16.vlgmr.msrb.gmra.mxu2 %v529_v55 }
 0x33f   :  { %v588_v58 = vpop.f32.mrf.mxu2 }
 0x340   :  { %v589_v59 = vadd.f32 %v821_v57, %v588_v58 }
 0x342   :  { %592 = vst [vmem:[#allocation6] sm:$0x3] %v589_v59 }
 0x343   :  { %603 = dma.vmem_to_hbm [thread:$0]  %s599_s19, 32, %s601_s22, [#allocation5]  }
 0x347   :  { %v590_v60 = vpop.f32.mrf.mxu2 }
 0x348   :  { %880 = dma.done.wait [#allocation5], 32  }
 0x349   :  { %881 = vsyncadd [#allocation5], 4294967264 }
 0x34a   :  { %608 = vsyncpa [#allocation4], 1 }
 0x34b   :  { %609 = vsyncpa [#allocation5], 1 }

</bundles_post_ra>
